<compile_context>
chip_gen: v7x
topology: tpu7x:2x2x1
jax: 0.10.0
libtpu: 0.0.40
codegen_flags: <defaults>
</compile_context>

<pallas_src>
import functools

import jax
import jax.numpy as jnp
import numpy as np
from jax.experimental import pallas as pl
from jax.experimental.pallas import tpu as pltpu


# --------------------------- per-layer projection kernel ---------------------------
def _gat_proj_kernel(x_ref, w_ref, a_ref, z_ref, asrc_t_ref, adst_ref, *, heads):
    """z = x @ W, attn = z @ A; emit z [N,H*C], a_src^T [H,N], a_dst [N,H]."""
    z = jnp.dot(x_ref[...], w_ref[...], preferred_element_type=jnp.float32)   # [N, H*C]
    attn = jnp.dot(z, a_ref[...], preferred_element_type=jnp.float32)         # [N, 2H]
    z_ref[...] = z
    asrc_t_ref[...] = attn[:, :heads].T          # single small transpose per layer
    adst_ref[...] = attn[:, heads:2 * heads]


# --------------------------- dst-tiled attention kernel ---------------------------
def _gat_attn_kernel(adj_ref, z_ref, asrc_t_ref, adst_ref, b_ref, out_ref,
                     *, heads, c, concat, apply_elu):
    # adj_ref    : [TILE, N]  int8  (rows = destination nodes of this tile)
    # z_ref      : [N, H*C]   f32   (all source nodes, resident across the grid)
    # asrc_t_ref : [H, N]     f32
    # adst_ref   : [TILE, H]  f32
    # b_ref      : [1, out_w] f32
    # Additive mask built ONCE per tile, shared by all heads: 0 where edge, -1e30 else.
    maskbias = (adj_ref[...].astype(jnp.float32) - 1.0) * jnp.float32(1e30)   # [TILE, N]

    def head_out(h):
        logits = adst_ref[:, h:h + 1] + asrc_t_ref[h:h + 1, :]        # [TILE, N]
        logits = jnp.maximum(logits, 0.2 * logits) + maskbias         # LeakyReLU(0.2) + mask
        m = jnp.max(logits, axis=-1, keepdims=True)                   # [TILE, 1]
        p = jnp.exp(logits - m)                                       # masked -> exp(-1e30) == 0
        denom = jnp.sum(p, axis=-1, keepdims=True)                    # [TILE, 1]
        zh = z_ref[:, h * c:(h + 1) * c]                              # [N, C]
        agg = jnp.dot(p.astype(jnp.bfloat16), zh.astype(jnp.bfloat16),
                      preferred_element_type=jnp.float32)             # [TILE, C]  (bf16 MXU)
        # Normalization deferred to the [TILE, C] output; EUP approx reciprocal.
        return agg * pl.reciprocal(denom, approx=True)

    def finish(o):
        if apply_elu:  # ELU(alpha=1); exp on the clamped value -> no overflow in dead branch
            o = jnp.where(o > 0, o, jnp.exp(jnp.minimum(o, 0.0)) - 1.0)
        return o

    if concat:
        # Write each head's result immediately -> per-head [TILE, N] temporaries die at once.
        for h in range(heads):
            out_ref[:, h * c:(h + 1) * c] = finish(head_out(h) + b_ref[:, h * c:(h + 1) * c])
    else:
        acc = head_out(0)
        for h in range(1, heads):
            acc = acc + head_out(h)
        out_ref[...] = finish(acc * (1.0 / jnp.float32(heads)) + b_ref[...])


# ----------------------------- host-side helpers -----------------------------
def _vmem_limit_bytes():
    try:
        cap = pltpu.get_tpu_info().vmem_capacity_bytes
    except Exception:
        cap = 64 * 1024 * 1024                       # conservative fallback (v7x size)
    # 48 MiB on v7x (64 MiB VMEM), capped at 100 MiB on v5e/v6e (128 MiB VMEM).
    return int(min(cap * 3 // 4, 100 * 1024 * 1024))


def _pick_tile_dst(n, budget_bytes=16 * 1024 * 1024):
    """Destination-row tile: multiple of 8, sized so ~5 f32 [TILE, N] temporaries fit."""
    if n <= 8:
        return n
    tile = max(8, budget_bytes // max(1, 5 * 4 * n))
    tile = min((tile // 8) * 8, 1024)
    n_pad = ((n + 7) // 8) * 8
    return max(8, min(tile, n_pad))


def _pack_attention(att_src, att_dst):
    """A [H*C, 2H] so (z @ A)[:, :H] = per-head a_src dots, [:, H:] = a_dst dots."""
    heads, c = att_src.shape
    a = jnp.zeros((heads * c, 2 * heads), jnp.float32)
    for h in range(heads):
        a = a.at[h * c:(h + 1) * c, h].set(att_src[h])
        a = a.at[h * c:(h + 1) * c, heads + h].set(att_dst[h])
    return a


def build_adj(edge_index, n):
    """Dense int8 adjacency with self-loops; adj[i, j] = 1 iff edge j -> i."""
    src, dst = edge_index[0], edge_index[1]
    adj = jnp.zeros((n, n), jnp.int8)
    adj = adj.at[dst, src].set(1)
    idx = jnp.arange(n)
    adj = adj.at[idx, idx].set(1)                    # self-loop invariant (masked softmax safe)
    return adj


def _gat_layer(x, adj, w, a_packed, bias, *, heads, c, concat, apply_elu,
               tile_dst=None, vmem_limit=None):
    n = x.shape[0]
    hc = heads * c
    vmem = lambda: pl.BlockSpec(memory_space=pltpu.MemorySpace.VMEM)

    # (a) projection + packed attention dots, once per layer (tiny, un-gridded).
    # TODO(synk): tile this over node rows too for very large N.
    z, asrc_t, adst = pl.pallas_call(
        functools.partial(_gat_proj_kernel, heads=heads),
        out_shape=(jax.ShapeDtypeStruct((n, hc), jnp.float32),
                   jax.ShapeDtypeStruct((heads, n), jnp.float32),
                   jax.ShapeDtypeStruct((n, heads), jnp.float32)),
        in_specs=[vmem(), vmem(), vmem()],
        out_specs=(vmem(), vmem(), vmem()),
    )(x, w, a_packed)

    # (b) dst-tiled attention / aggregation.
    tile = tile_dst if tile_dst is not None else _pick_tile_dst(n)
    out_w = hc if concat else c
    if vmem_limit is None:
        vmem_limit = _vmem_limit_bytes()
    kernel = functools.partial(_gat_attn_kernel, heads=heads, c=c,
                               concat=concat, apply_elu=apply_elu)
    return pl.pallas_call(
        kernel,
        out_shape=jax.ShapeDtypeStruct((n, out_w), jnp.float32),
        grid=(pl.cdiv(n, tile),),
        in_specs=[
            pl.BlockSpec((tile, n), lambda i: (i, 0)),       # adj rows (int8), pipelined
            pl.BlockSpec((n, hc), lambda i: (0, 0)),         # z (all src nodes), resident
            pl.BlockSpec((heads, n), lambda i: (0, 0)),      # a_src^T, resident
            pl.BlockSpec((tile, heads), lambda i: (i, 0)),   # a_dst rows of this tile
            pl.BlockSpec((1, out_w), lambda i: (0, 0)),      # bias
        ],
        out_specs=pl.BlockSpec((tile, out_w), lambda i: (i, 0)),
        compiler_params=pltpu.CompilerParams(
            dimension_semantics=("parallel",),               # megacore split on v7x
            vmem_limit_bytes=int(vmem_limit)),
    )(adj, z, asrc_t, adst, bias)


def inter_sector_gat_forward(x, edge_index, params, *, tile_dst=None):
    n = x.shape[0]
    adj = build_adj(edge_index, n)
    a1 = _pack_attention(params["att_src1"], params["att_dst1"])
    a2 = _pack_attention(params["att_src2"], params["att_dst2"])
    heads1, c1 = params["att_src1"].shape
    heads2, c2 = params["att_src2"].shape
    vmem_limit = _vmem_limit_bytes()

    h = _gat_layer(x, adj, params["w1"], a1, params["bias1"].reshape(1, -1),
                   heads=heads1, c=c1, concat=True, apply_elu=True,
                   tile_dst=tile_dst, vmem_limit=vmem_limit)
    return _gat_layer(h, adj, params["w2"], a2, params["bias2"].reshape(1, -1),
                      heads=heads2, c=c2, concat=False, apply_elu=False,
                      tile_dst=tile_dst, vmem_limit=vmem_limit)


# ---------------- plain-JAX reference (for correctness check) ----------------
def gat_layer_ref(x, adj, w, att_src, att_dst, bias, *, heads, out_per_head,
                  concat, apply_elu):
    z = x @ w                                                  # [N, H*C]
    n = x.shape[0]
    z3 = z.reshape(n, heads, out_per_head)
    asrc = jnp.einsum("nhc,hc->nh", z3, att_src)               # [N, H]
    adst = jnp.einsum("nhc,hc->nh", z3, att_dst)               # [N, H]
    logits = adst[:, None, :] + asrc[None, :, :]               # [N_dst, N_src, H]
    logits = jnp.where(logits > 0, logits, 0.2 * logits)
    mask = (adj > 0)[:, :, None]
    logits = jnp.where(mask, logits, -1e30)
    logits = logits - jnp.max(logits, axis=1, keepdims=True)
    p = jnp.exp(logits)
    p = jnp.where(mask, p, 0.0)
    alpha = p / jnp.sum(p, axis=1, keepdims=True)              # [N, N, H]
    out = jnp.einsum("ijh,jhc->ihc", alpha, z3)                # [N, H, C]
    if concat:
        out = out.reshape(n, heads * out_per_head)
    else:
        out = out.mean(axis=1)
    out = out + bias
    if apply_elu:
        out = jnp.where(out > 0, out, jnp.exp(out) - 1.0)
    return out


def inter_sector_gat_ref(x, edge_index, params):
    n = x.shape[0]
    adj = build_adj(edge_index, n).astype(jnp.float32)
    h = gat_layer_ref(x, adj, params["w1"], params["att_src1"], params["att_dst1"],
                      params["bias1"], heads=4, out_per_head=4, concat=True,
                      apply_elu=True)
    return gat_layer_ref(h, adj, params["w2"], params["att_src2"], params["att_dst2"],
                         params["bias2"], heads=1, out_per_head=16, concat=False,
                         apply_elu=False)


if __name__ == "__main__":
    key = jax.random.PRNGKey(0)
    n_nodes, in_ch, hidden = 16, 16, 16    # N=16 with tile_dst=8 -> 2-step parallel grid

    ks = jax.random.split(key, 10)
    params = {
        # conv1: Linear(16 -> heads*out = 16, bias=False), att_{src,dst}: [4, 4], bias: [16]
        "w1":       0.2 * jax.random.normal(ks[0], (in_ch, 16), jnp.float32),
        "att_src1": 0.2 * jax.random.normal(ks[1], (4, 4), jnp.float32),
        "att_dst1": 0.2 * jax.random.normal(ks[2], (4, 4), jnp.float32),
        "bias1":    0.1 * jax.random.normal(ks[3], (16,), jnp.float32),
        # conv2: Linear(16 -> 16, bias=False), att_{src,dst}: [1, 16], bias: [16]
        "w2":       0.2 * jax.random.normal(ks[4], (hidden, 16), jnp.float32),
        "att_src2": 0.2 * jax.random.normal(ks[5], (1, 16), jnp.float32),
        "att_dst2": 0.2 * jax.random.normal(ks[6], (1, 16), jnp.float32),
        "bias2":    0.1 * jax.random.normal(ks[7], (16,), jnp.float32),
    }

    x = jax.random.normal(ks[8], (n_nodes, in_ch), jnp.float32)
    # simple bidirectional ring graph (no duplicate edges, no self loops)
    src = np.concatenate([np.arange(n_nodes), (np.arange(n_nodes) + 1) % n_nodes])
    dst = np.concatenate([(np.arange(n_nodes) + 1) % n_nodes, np.arange(n_nodes)])
    edge_index = jnp.asarray(np.stack([src, dst]), dtype=jnp.int32)   # [2, 32]

    out = inter_sector_gat_forward(x, edge_index, params, tile_dst=8)
    out = jax.block_until_ready(out)

    ref = inter_sector_gat_ref(x, edge_index, params)
    ref = jax.block_until_ready(ref)

    assert out.shape == (n_nodes, hidden)
    # Tolerance relaxed for the bf16-MXU aggregation + approx-reciprocal path.
    np.testing.assert_allclose(np.asarray(out), np.asarray(ref), rtol=3e-2, atol=3e-2)
    print("KERNEL_OK")
</pallas_src>

<mosaic_0001>
module attributes {stable_mosaic.version = 11 : i64} {
  func.func @_gat_proj_kernel(%arg0: memref<16x16xf32, #tpu.memory_space<vmem>>, %arg1: memref<16x16xf32, #tpu.memory_space<vmem>>, %arg2: memref<16x8xf32, #tpu.memory_space<vmem>>, %arg3: memref<16x16xf32, #tpu.memory_space<vmem>>, %arg4: memref<4x16xf32, #tpu.memory_space<vmem>>, %arg5: memref<16x4xf32, #tpu.memory_space<vmem>>) attributes {dimension_semantics = [], scalar_prefetch = 0 : i64, scratch_operands = 0 : i64, tpu.core_type = #tpu.core_type<tc>} {
    %c0 = arith.constant 0 : index
    %c0_0 = arith.constant 0 : index
    %0 = vector.load %arg0[%c0, %c0_0] : memref<16x16xf32, #tpu.memory_space<vmem>>, vector<16x16xf32>
    %c0_1 = arith.constant 0 : index
    %c0_2 = arith.constant 0 : index
    %1 = vector.load %arg1[%c0_1, %c0_2] : memref<16x16xf32, #tpu.memory_space<vmem>>, vector<16x16xf32>
    %cst = arith.constant dense<0.000000e+00> : vector<16x16xf32>
    %2 = tpu.matmul %0, %1, %cst {dimension_numbers = #tpu.dot_dimension_numbers<[1], [0], [0], [1], [0, 0, 1, 1], [], []>} : vector<16x16xf32>, vector<16x16xf32>, vector<16x16xf32> -> vector<16x16xf32>
    %c0_3 = arith.constant 0 : index
    %c0_4 = arith.constant 0 : index
    %3 = vector.load %arg2[%c0_3, %c0_4] : memref<16x8xf32, #tpu.memory_space<vmem>>, vector<16x8xf32>
    %cst_5 = arith.constant dense<0.000000e+00> : vector<16x8xf32>
    %4 = tpu.matmul %2, %3, %cst_5 {dimension_numbers = #tpu.dot_dimension_numbers<[1], [0], [0], [1], [0, 0, 1, 1], [], []>} : vector<16x16xf32>, vector<16x8xf32>, vector<16x8xf32> -> vector<16x8xf32>
    %c0_6 = arith.constant 0 : index
    %c0_7 = arith.constant 0 : index
    %5 = vector.load %arg3[%c0_6, %c0_7] : memref<16x16xf32, #tpu.memory_space<vmem>>, vector<16x16xf32>
    tpu.vector_store %arg3[%c0_6, %c0_7], %2 {strides = array<i32>} : memref<16x16xf32, #tpu.memory_space<vmem>>, vector<16x16xf32>,
    %6 = vector.extract_strided_slice %4 {offsets = [0, 0], sizes = [16, 4], strides = [1, 1]} : vector<16x8xf32> to vector<16x4xf32>
    %7 = tpu.transpose %6, [1, 0] : vector<16x4xf32> -> vector<4x16xf32>
    %c0_8 = arith.constant 0 : index
    %c0_9 = arith.constant 0 : index
    %8 = vector.load %arg4[%c0_8, %c0_9] : memref<4x16xf32, #tpu.memory_space<vmem>>, vector<4x16xf32>
    tpu.vector_store %arg4[%c0_8, %c0_9], %7 {strides = array<i32>} : memref<4x16xf32, #tpu.memory_space<vmem>>, vector<4x16xf32>,
    %9 = vector.extract_strided_slice %4 {offsets = [0, 4], sizes = [16, 4], strides = [1, 1]} : vector<16x8xf32> to vector<16x4xf32>
    %c0_10 = arith.constant 0 : index
    %c0_11 = arith.constant 0 : index
    %10 = vector.load %arg5[%c0_10, %c0_11] : memref<16x4xf32, #tpu.memory_space<vmem>>, vector<16x4xf32>
    tpu.vector_store %arg5[%c0_10, %c0_11], %9 {strides = array<i32>} : memref<16x4xf32, #tpu.memory_space<vmem>>, vector<16x4xf32>,
    return
  }
}

</mosaic_0001>

<bundles_post_ra>
// kernel: tpu_custom_call.1
= control target key start
LH: loop header
LB: loop body
LE: loop exit
PB: predicated region body
PF: predicated region fallthrough
CT: control target
= control target key end

     0   :  { %11 = vsyncpa [#allocation3], 0  ;;  %s499_s0 = inlined_call_operand.vmem [shape: f32[16,16], index: 0, kind: input, shape index: {}]   ;;  %s500_s1 = inlined_call_operand.hbm [shape: f32[16,16], index: 1, kind: input, shape index: {}]   ;;  %s501_s2 = inlined_call_operand.vmem [shape: f32[16,8], index: 2, kind: input, shape index: {}]   ;;  %s502_s3 = inlined_call_operand.hbm [shape: f32[16,16], index: 3, kind: output, shape index: {0}]   ;;  %s503_s4 = inlined_call_operand.hbm [shape: f32[4,16], index: 4, kind: output, shape index: {1}]   ;;  %s504_s5 = inlined_call_operand.vmem [shape: f32[16,4], index: 5, kind: output, shape index: {2}]  }
   0x1   :  { %12 = vsyncpa [#allocation4], 0 }
   0x2   :  { %13 = vsyncpa [#allocation7], 0  ;;  %s397_s18 = smov [#allocation2]   ;;  %s325_s22 = scalar_lea.hbm %s500_s1, 256 }
   0x3   :  { %s21_s19 = sshll.u32 %s397_s18, 4  ;;  %p326_p0 = scmp.ne.s32.totalorder %s500_s1, %s325_s22  ;;  %s22_s19 = int_to_ptr.vmem [resolvable:$true] %s21_s19 }
   0x4   :  { %p329_p1 = scmp.lt.u32.totalorder %s325_s22, %s500_s1 }
   0x6   :  { %p331_p2 = pnand %p329_p1, %p326_p0 }
   0x8   :  { %334 = shalt.err (!%p331_p2)
}
   0x9   :  { %s335_s27 = scalar_lea.vmem %s22_s19, 256  ;;  %p340_p4 = scmp.lt.s32.totalorder %s22_s19, %s22_s19 }
   0xa   :  { %p336_p3 = scmp.ne.s32.totalorder %s22_s19, %s335_s27  ;;  %p341_p5 = scmp.lt.s32.totalorder %s335_s27, %s335_s27 }
   0xc   :  { %p342_p6 = por %p341_p5, %p340_p4 }
   0xe   :  { %p343_p7 = pnand %p342_p6, %p336_p3 }
  0x10   :  { %346 = shalt.err (!%p343_p7)
}
  0x11   :  { %s398_s28 = smov 128   ;;  %s399_s29 = smov 8  }
  0x12   :  { %27 = dma.hbm_to_vmem [thread:$0]  %s500_s1, 256, %s22_s19, [#allocation3], %s398_s28, %s398_s28, %s399_s29  }
  0x13   :  { %391 = dma.done.wait [#allocation3], 256  }
  0x14   :  { %392 = vsyncadd [#allocation3], 4294967040  ;;  %vm37_vm0 = vcmask 130048   ;;  %v35_v0 = vld [vmem:[#allocation2] sm:$0xff]  ;;  %v36_v1 = vld [vmem:[#allocation2 + $0x8] sm:$0xff] }
  0x15   :  { %v33_v2 = vld [vmem:[%s499_s0] sm:$0xff]  ;;  %v310_v3 = vpack.c.bf16 %v36_v1, %v35_v0  ;;  %v120_v5 = vld [vmem:[%s501_s2 + $0x8] sm:$0xff] }
  0x16   :  { %300 = vmatprep.mubr.msk.f32.mxu0 %vm37_vm0, %v33_v2  ;;  %v119_v4 = vld [vmem:[%s501_s2] sm:$0xff]  ;;  %v34_v7 = vld [vmem:[%s499_s0 + $0x8] sm:$0xff]  ;;  %s400_s2 = smov 124   ;;  %s401_s0 = smov [#allocation5]  }
  0x17   :  { %v314_v6 = vpack.c.bf16 %v120_v5, %v119_v4  ;;  %311 = vmatprep.subr.bf16.mxu0 %v310_v3  ;;  %s254_s14 = sshll.u32 %s401_s0, 4  ;;  %s255_s14 = int_to_ptr.vmem [resolvable:$true] %s254_s14 }
  0x18   :  { %313 = vmatpush3.bf16.msra.mxu0 %v310_v3  ;;  %s347_s15 = scalar_lea.vmem %s255_s14, 256  ;;  %p352_p9 = scmp.lt.s32.totalorder %s255_s14, %s255_s14 }
  0x19   :  { %315 = vmatprep.subr.bf16.mxu1 %v314_v6  ;;  %p348_p8 = scmp.ne.s32.totalorder %s255_s14, %s347_s15  ;;  %p353_p10 = scmp.lt.s32.totalorder %s347_s15, %s347_s15 }
  0x1a   :  { %317 = vmatpush3.bf16.msra.mxu1 %v314_v6 }
  0x1b   :  { %301 = vmatmul.mubr.msk.f32.vlgmr.msra.gmra.mrb[0].mxu0 %vm37_vm0, %v34_v7  ;;  %p354_p11 = por %p353_p10, %p352_p9 }
  0x1d   :  { %p355_p12 = pnand %p354_p11, %p348_p8 }
  0xee   :  { %v302_v8 = vpop.f32.mrb[0].mxu0 }
  0xef   :  { %203 = vst.msk [vmem:[#allocation5 + $0x8] sm:$0xff] %vm37_vm0, %v302_v8  ;;  %v110_v9 = vpop.f32.mrb[1].mxu0 }
  0xf0   :  { %202 = vst.msk [vmem:[#allocation5] sm:$0xff] %vm37_vm0, %v110_v9  ;;  %307 = vmatprep.mubr.msk.f32.mxu1 %vm37_vm0, %v110_v9 }
  0xf1   :  { %308 = vmatmul.mubr.msk.f32.vlgmr.msra.gmra.mrb[0].mxu1 %vm37_vm0, %v302_v8 }
 0x1c4   :  { %v309_v10 = vpop.f32.mrb[0].mxu1 }
 0x1c5   :  { %v193_v11 = vpop.f32.mrb[1].mxu1 }
 0x1c6   :  { %204 = vxpose.xlu1.b32.start [1/2] (short) (narrow) %v193_v11, 8  ;;  %240 = vrot.lane.b32.xlu0 %v193_v11, %s400_s2 }
 0x1c7   :  { %358 = shalt.err (!%p355_p12)
}
 0x1c8   :  { %s359_s18 = scalar_lea.hbm %s502_s3, 256 }
 0x1c9   :  { %p360_p13 = scmp.ne.s32.totalorder %s502_s3, %s359_s18  ;;  %p363_p0 = scmp.lt.u32.totalorder %s359_s18, %s502_s3 }
 0x1cb   :  { %p365_p1 = pnand %p363_p0, %p360_p13 }
 0x1cd   :  { %368 = shalt.err (!%p365_p1)
}
 0x1ce   :  { %260 = dma.vmem_to_hbm [thread:$0]  %s255_s14, 256, %s502_s3, [#allocation4], %s398_s28, %s398_s28, %s399_s29   ;;  %205 = vxpose.xlu1.b32.end [2/2] (short) (narrow) %v309_v10, 8  ;;  %vm246_vm1 = vcmask 31744   ;;  %vm236_vm2 = vcmask 125952  }
 0x1cf   :  { %242 = vrot.lane.b32.xlu0 %v309_v10, %s400_s2  ;;  %s402_s6 = smov [#allocation6]  }
 0x1d0   :  { %s267_s7 = sshll.u32 %s402_s6, 4  ;;  %s268_s7 = int_to_ptr.vmem [resolvable:$true] %s267_s7 }
 0x1d1   :  { %s369_s3 = scalar_lea.vmem %s268_s7, 64  ;;  %p374_p3 = scmp.lt.s32.totalorder %s268_s7, %s268_s7 }
 0x1d2   :  { %p370_p2 = scmp.ne.s32.totalorder %s268_s7, %s369_s3  ;;  %p375_p4 = scmp.lt.s32.totalorder %s369_s3, %s369_s3 }
 0x1d4   :  { %p376_p5 = por %p375_p4, %p374_p3 }
 0x1d6   :  { %p377_p6 = pnand %p376_p5, %p370_p2 }
 0x238   :  { %v241_v12 = vpop.permute.xlu0 %240 }
 0x239   :  { %247 = vst.msk [vmem:[%s504_s5] sm:$0xff] %vm246_vm1, %v241_v12 }
 0x241   :  { %v243_v13 = vpop.permute.xlu0 %242 }
 0x242   :  { %248 = vst.msk [vmem:[%s504_s5 + $0x8] sm:$0xff] %vm246_vm1, %v243_v13 }
 0x24a   :  { %v220_v14 = vpop.trf.xlu1 }
 0x24b   :  { %237 = vst.msk [vmem:[#allocation6] sm:$0xf] %vm236_vm2, %v220_v14 }
 0x24c   :  { %380 = shalt.err (!%p377_p6)
}
 0x24d   :  { %s381_s8 = scalar_lea.hbm %s503_s4, 64 }
 0x24e   :  { %p382_p7 = scmp.ne.s32.totalorder %s503_s4, %s381_s8  ;;  %p385_p8 = scmp.lt.u32.totalorder %s381_s8, %s503_s4 }
 0x250   :  { %p387_p9 = pnand %p385_p8, %p382_p7 }
 0x252   :  { %390 = shalt.err (!%p387_p9)
}
 0x253   :  { %270 = dma.vmem_to_hbm [thread:$0]  %s268_s7, 64, %s503_s4, [#allocation7]  }
 0x254   :  { %393 = dma.done.wait [#allocation4], 256  }
 0x255   :  { %394 = vsyncadd [#allocation4], 4294967040 }
 0x256   :  { %395 = dma.done.wait [#allocation7], 64  }
 0x257   :  { %396 = vsyncadd [#allocation7], 4294967232 }
 0x258   :  { %281 = vsyncpa [#allocation3], 1 }
 0x259   :  { %282 = vsyncpa [#allocation4], 1 }
 0x25a   :  { %283 = vsyncpa [#allocation7], 1 }

</bundles_post_ra>
